<compile_context>
chip_gen: v5e
topology: v5e:2x2
jax: 0.10.0
libtpu: 0.0.40
codegen_flags: <defaults>
</compile_context>

<pallas_src>
import jax
import jax.numpy as jnp
from jax.experimental import pallas as pl
from jax.experimental.pallas import tpu as pltpu


# ----------------------------------------------------------------------------
# Kernel: Tb recurrent steps per grid iteration, hidden carried in VMEM.
# ----------------------------------------------------------------------------
def asrnn_scan_kernel(x_ref, h0_ref, wgl_ref, att_ref, bgl_ref, out_ref, h_scr):
    t = pl.program_id(0)

    @pl.when(t == 0)
    def _():
        h_scr[...] = h0_ref[...].astype(jnp.float32)

    tb, bs, _ = x_ref.shape
    hidden = h_scr.shape[-1]

    # Resident weights/bias: load once per grid step, hoisted out of the loop
    # (JAX does not CSE broadcast_in_dim, so the bias broadcast is hoisted too).
    wgl = wgl_ref[...]                                            # (K, 2H)
    att = att_ref[...]                                            # (H, 2H)
    bgl = jnp.broadcast_to(bgl_ref[...], (bs, 2 * hidden))        # (bs, 2H)

    h = h_scr[...]                                                # (bs, H) f32
    # Tb is small and static -> this fully unrolls at trace time: static output
    # indices, no per-step grid dispatch, and the LLO scheduler sees all steps.
    for j in range(tb):
        # Fused gate/candidate pre-activation: 2 MXU pushes + 1 vadd chain.
        pre = (jnp.dot(x_ref[j], wgl, preferred_element_type=jnp.float32)
               + jnp.dot(h, att, preferred_element_type=jnp.float32)
               + bgl)                                             # (bs, 2H)
        # Halves of the fused result; the H-offset slice is an in-vreg lane
        # relayout (XLU slot), not a memory op.
        g = pre[:, :hidden]
        c = pre[:, hidden:]
        h = jax.nn.sigmoid(g) * jnp.tanh(c)                       # f32 VPU/EUP (v5e-safe)
        # TODO(synk): H=32 (<128 lanes) -> masked vst per step; inherent to the
        # module's hidden_size.  The HBM writeback is still one contiguous
        # (Tb, bs, H) DMA per grid step.
        out_ref[j] = h.astype(out_ref.dtype)

    h_scr[...] = h


# ----------------------------------------------------------------------------
# One-time parameter preparation (hoisted off the per-call critical path).
# ----------------------------------------------------------------------------
def prepare_asrnn_params(Wx, bx, Wh, gamma=0.01):
    """Wx: (2H, in), bx: (2H,), Wh: (H, H)
       -> (Wgl (in, 2H), Att (H, 2H), bgl (1, 2H))."""
    hidden = Wh.shape[0]
    A_t = (Wh - Wh.T - gamma * jnp.eye(hidden, dtype=Wh.dtype)).T   # A^T, A = Wh-Wh^T-gI
    Wgl = Wx.T                                   # cols [:H]=gate, [H:]=candidate
    Att = jnp.concatenate([A_t, A_t], axis=1)    # (H, 2H): Lh feeds both halves
    bgl = bx[None, :]                            # (1, 2H)
    return Wgl, Att, bgl


def _choose_tb(T, cap=32):
    """Largest divisor of T not exceeding `cap` (avoids any wrapper-side pad)."""
    tb = min(T, cap)
    while T % tb != 0:
        tb -= 1
    return tb


# ----------------------------------------------------------------------------
# Pallas call wrapper: T//Tb grid steps, Tb recurrent steps unrolled per step.
# ----------------------------------------------------------------------------
@jax.jit
def _asrnn_pallas(x, h0, Wgl, Att, bgl):
    T, bs, K = x.shape
    hidden = Att.shape[0]
    tb = _choose_tb(T)

    grid_spec = pltpu.PrefetchScalarGridSpec(
        num_scalar_prefetch=0,
        grid=(T // tb,),
        in_specs=[
            pl.BlockSpec((tb, bs, K), lambda t: (t, 0, 0)),        # x: Tb steps / grid iter
            pl.BlockSpec((bs, hidden), lambda t: (0, 0)),          # h0: resident
            pl.BlockSpec((K, 2 * hidden), lambda t: (0, 0)),       # Wgl: resident
            pl.BlockSpec((hidden, 2 * hidden), lambda t: (0, 0)),  # [A^T|A^T]: resident
            pl.BlockSpec((1, 2 * hidden), lambda t: (0, 0)),       # bias: resident
        ],
        out_specs=pl.BlockSpec((tb, bs, hidden), lambda t: (t, 0, 0)),
        scratch_shapes=[pltpu.VMEM((bs, hidden), jnp.float32)],    # carried hidden
    )

    return pl.pallas_call(
        asrnn_scan_kernel,
        out_shape=jax.ShapeDtypeStruct((T, bs, hidden), x.dtype),
        grid_spec=grid_spec,
        # Time axis is a serial recurrence -> must stay "arbitrary".  A megacore
        # "parallel" axis (v7x) would only apply over independent sequences.
        compiler_params=pltpu.CompilerParams(
            dimension_semantics=("arbitrary",)),
    )(x, h0, Wgl, Att, bgl)


def asrnn_scan(x, params, hn=None):
    """Run the ASRNN cell over all T steps of x (T, bs, in) -> (T, bs, H)."""
    T, bs, _ = x.shape
    Wgl, Att, bgl = params
    hidden = Att.shape[0]
    if hn is None:
        hn = jnp.zeros((1, bs, hidden), dtype=x.dtype)
    return _asrnn_pallas(x, hn[0], Wgl, Att, bgl)


def asrnn_forward(x, params, hn=None):
    """Module-faithful forward: x (1, bs, in), hn (1, bs, H) -> (None, nh (1, bs, H))."""
    L, bs, _ = x.shape
    assert L == 1
    outs = asrnn_scan(x, params, hn)              # (1, bs, H)
    return None, outs[-1:, :, :]


# ----------------------------------------------------------------------------
# Pure-JAX references mirroring the PyTorch module.
# ----------------------------------------------------------------------------
def _cell_reference(x2, h2, Wx, bx, Wh, gamma=0.01):
    hidden = Wh.shape[0]
    Lx = x2 @ Wx.T + bx
    A = Wh - Wh.T - gamma * jnp.eye(hidden, dtype=Wh.dtype)
    Lh = h2 @ A.T
    gates = jax.nn.sigmoid(Lx[:, :hidden] + Lh)
    return gates * jnp.tanh(Lx[:, hidden:] + Lh)


def asrnn_reference(x, Wx, bx, Wh, hn=None, gamma=0.01):
    L, bs, _ = x.shape
    hidden = Wh.shape[0]
    if hn is None:
        hn = jnp.zeros((1, bs, hidden), dtype=x.dtype)
    nh = _cell_reference(x[0], hn[0], Wx, bx, Wh, gamma)
    return None, nh[None, :, :]


def asrnn_scan_reference(x, Wx, bx, Wh, hn, gamma=0.01):
    def step(h, xt):
        nh = _cell_reference(xt, h, Wx, bx, Wh, gamma)
        return nh, nh
    _, outs = jax.lax.scan(step, hn[0], x)
    return outs


if __name__ == "__main__":
    # Small shapes consistent with the module: batch=8, input_size=16, hidden=32.
    input_size = 16
    hidden_size = 32
    bs = 8

    key = jax.random.PRNGKey(0)
    k_x, k_h, k_wx, k_bx, k_wh, k_xs, k_xl = jax.random.split(key, 7)

    x = jax.random.normal(k_x, (1, bs, input_size), dtype=jnp.float32)
    hn = jax.random.normal(k_h, (1, bs, hidden_size), dtype=jnp.float32)

    Wx = jax.random.normal(k_wx, (2 * hidden_size, input_size),
                           dtype=jnp.float32) * 0.1
    bx = jax.random.normal(k_bx, (2 * hidden_size,), dtype=jnp.float32) * 0.1
    Wh = jax.random.normal(k_wh, (hidden_size, hidden_size),
                           dtype=jnp.float32) * 0.1

    # Parameter prep done ONCE (hoisted off the per-call critical path).
    params = prepare_asrnn_params(Wx, bx, Wh, gamma=0.01)

    # 1) Module-faithful single-step forward (L=1).
    _, nh = asrnn_forward(x, params, hn)
    nh = jax.block_until_ready(nh)
    _, nh_ref = asrnn_reference(x, Wx, bx, Wh, hn)
    assert nh.shape == (1, bs, hidden_size)
    assert jnp.allclose(nh, nh_ref, atol=1e-5, rtol=1e-5)

    # 2) T=8 sequence: whole recurrence in a single grid step (Tb=T, grid=(1,)).
    T = 8
    xs = jax.random.normal(k_xs, (T, bs, input_size), dtype=jnp.float32)
    outs = jax.block_until_ready(asrnn_scan(xs, params, hn))
    outs_ref = asrnn_scan_reference(xs, Wx, bx, Wh, hn)
    assert outs.shape == (T, bs, hidden_size)
    assert jnp.allclose(outs, outs_ref, atol=1e-5, rtol=1e-5)

    # 3) Longer sequence exercising the VMEM-carried hidden state across
    #    multiple grid steps (T=48 -> Tb=24, grid=(2,)).
    T2 = 48
    xl = jax.random.normal(k_xl, (T2, bs, input_size), dtype=jnp.float32)
    outs2 = jax.block_until_ready(asrnn_scan(xl, params, hn))
    outs2_ref = asrnn_scan_reference(xl, Wx, bx, Wh, hn)
    assert outs2.shape == (T2, bs, hidden_size)
    assert jnp.allclose(outs2, outs2_ref, atol=2e-5, rtol=2e-5)

    print("KERNEL_OK")
</pallas_src>

<mosaic_0001>
module attributes {stable_mosaic.version = 11 : i64} {
  func.func @asrnn_scan_kernel(%arg0: i32, %arg1: memref<1x8x16xf32, #tpu.memory_space<vmem>>, %arg2: memref<8x32xf32, #tpu.memory_space<vmem>>, %arg3: memref<16x64xf32, #tpu.memory_space<vmem>>, %arg4: memref<32x64xf32, #tpu.memory_space<vmem>>, %arg5: memref<1x64xf32, #tpu.memory_space<vmem>>, %arg6: memref<1x8x32xf32, #tpu.memory_space<vmem>>, %arg7: memref<8x32xf32, #tpu.memory_space<vmem>>) attributes {dimension_semantics = [#tpu.dimension_semantics<arbitrary>], iteration_bounds = array<i64: 1>, scalar_prefetch = 0 : i64, scratch_operands = 1 : i64, tpu.core_type = #tpu.core_type<tc>, window_params = [{transform_indices = @transform_0, window_bounds = array<i64: 1, 8, 16>}, {pipeline_mode = #tpu.pipeline_mode<synchronous>, transform_indices = @transform_1, window_bounds = array<i64: 8, 32>}, {pipeline_mode = #tpu.pipeline_mode<synchronous>, transform_indices = @transform_2, window_bounds = array<i64: 16, 64>}, {pipeline_mode = #tpu.pipeline_mode<synchronous>, transform_indices = @transform_3, window_bounds = array<i64: 32, 64>}, {pipeline_mode = #tpu.pipeline_mode<synchronous>, transform_indices = @transform_4, window_bounds = array<i64: 1, 64>}, {transform_indices = @transform_5, window_bounds = array<i64: 1, 8, 32>}]} {
    %c0_i32 = arith.constant 0 : i32
    %0 = arith.cmpi eq, %arg0, %c0_i32 : i32
    %1 = arith.extui %0 : i1 to i32
    %c0_i32_0 = arith.constant 0 : i32
    %2 = arith.cmpi ne, %1, %c0_i32_0 : i32
    scf.if %2 {
      %c0_18 = arith.constant 0 : index
      %c0_19 = arith.constant 0 : index
      %28 = vector.load %arg2[%c0_18, %c0_19] : memref<8x32xf32, #tpu.memory_space<vmem>>, vector<8x32xf32>
      %c0_20 = arith.constant 0 : index
      %c0_21 = arith.constant 0 : index
      %29 = vector.load %arg7[%c0_20, %c0_21] : memref<8x32xf32, #tpu.memory_space<vmem>>, vector<8x32xf32>
      tpu.vector_store %arg7[%c0_20, %c0_21], %28 {strides = array<i32>} : memref<8x32xf32, #tpu.memory_space<vmem>>, vector<8x32xf32>,
    } else {
    }
    %c0 = arith.constant 0 : index
    %c0_1 = arith.constant 0 : index
    %3 = vector.load %arg3[%c0, %c0_1] : memref<16x64xf32, #tpu.memory_space<vmem>>, vector<16x64xf32>
    %c0_2 = arith.constant 0 : index
    %c0_3 = arith.constant 0 : index
    %4 = vector.load %arg4[%c0_2, %c0_3] : memref<32x64xf32, #tpu.memory_space<vmem>>, vector<32x64xf32>
    %c0_4 = arith.constant 0 : index
    %c0_5 = arith.constant 0 : index
    %5 = vector.load %arg5[%c0_4, %c0_5] : memref<1x64xf32, #tpu.memory_space<vmem>>, vector<1x64xf32>
    %6 = vector.shape_cast %5 : vector<1x64xf32> to vector<1x64xf32>
    %7 = vector.broadcast %6 : vector<1x64xf32> to vector<8x64xf32>
    %c0_6 = arith.constant 0 : index
    %c0_7 = arith.constant 0 : index
    %8 = vector.load %arg7[%c0_6, %c0_7] : memref<8x32xf32, #tpu.memory_space<vmem>>, vector<8x32xf32>
    %c0_8 = arith.constant 0 : index
    %c0_9 = arith.constant 0 : index
    %c0_10 = arith.constant 0 : index
    %9 = vector.load %arg1[%c0_8, %c0_9, %c0_10] : memref<1x8x16xf32, #tpu.memory_space<vmem>>, vector<1x8x16xf32>
    %10 = vector.shape_cast %9 : vector<1x8x16xf32> to vector<8x16xf32>
    %cst = arith.constant dense<0.000000e+00> : vector<8x64xf32>
    %11 = tpu.matmul %10, %3, %cst {dimension_numbers = #tpu.dot_dimension_numbers<[1], [0], [0], [1], [0, 0, 1, 1], [], []>} : vector<8x16xf32>, vector<16x64xf32>, vector<8x64xf32> -> vector<8x64xf32>
    %cst_11 = arith.constant dense<0.000000e+00> : vector<8x64xf32>
    %12 = tpu.matmul %8, %4, %cst_11 {dimension_numbers = #tpu.dot_dimension_numbers<[1], [0], [0], [1], [0, 0, 1, 1], [], []>} : vector<8x32xf32>, vector<32x64xf32>, vector<8x64xf32> -> vector<8x64xf32>
    %13 = arith.addf %11, %12 : vector<8x64xf32>
    %14 = arith.addf %13, %7 : vector<8x64xf32>
    %15 = vector.extract_strided_slice %14 {offsets = [0, 0], sizes = [8, 32], strides = [1, 1]} : vector<8x64xf32> to vector<8x32xf32>
    %16 = vector.extract_strided_slice %14 {offsets = [0, 32], sizes = [8, 32], strides = [1, 1]} : vector<8x64xf32> to vector<8x32xf32>
    %17 = arith.negf %15 : vector<8x32xf32>
    %18 = math.exp %17 : vector<8x32xf32>
    %cst_12 = arith.constant 1.000000e+00 : f32
    %19 = vector.broadcast %cst_12 : f32 to vector<8x32xf32>
    %20 = arith.addf %19, %18 : vector<8x32xf32>
    %21 = arith.divf %19, %20 : vector<8x32xf32>
    %22 = math.tanh %16 : vector<8x32xf32>
    %23 = arith.mulf %21, %22 : vector<8x32xf32>
    %c0_13 = arith.constant 0 : index
    %c0_14 = arith.constant 0 : index
    %c0_15 = arith.constant 0 : index
    %24 = vector.load %arg6[%c0_13, %c0_14, %c0_15] : memref<1x8x32xf32, #tpu.memory_space<vmem>>, vector<1x8x32xf32>
    %25 = vector.shape_cast %24 : vector<1x8x32xf32> to vector<8x32xf32>
    %26 = vector.shape_cast %23 : vector<8x32xf32> to vector<1x8x32xf32>
    tpu.vector_store %arg6[%c0_13, %c0_14, %c0_15], %26 {strides = array<i32>} : memref<1x8x32xf32, #tpu.memory_space<vmem>>, vector<1x8x32xf32>,
    %c0_16 = arith.constant 0 : index
    %c0_17 = arith.constant 0 : index
    %27 = vector.load %arg7[%c0_16, %c0_17] : memref<8x32xf32, #tpu.memory_space<vmem>>, vector<8x32xf32>
    tpu.vector_store %arg7[%c0_16, %c0_17], %23 {strides = array<i32>} : memref<8x32xf32, #tpu.memory_space<vmem>>, vector<8x32xf32>,
    return
  }
  func.func @transform_0(%arg0: i32) -> (i32, i32, i32) {
    %c0_i32 = arith.constant 0 : i32
    %c0_i32_0 = arith.constant 0 : i32
    %c0_i32_1 = arith.constant 0 : i32
    return %arg0, %c0_i32, %c0_i32_0 : i32, i32, i32
  }
  func.func @transform_1(%arg0: i32) -> (i32, i32) {
    %c0_i32 = arith.constant 0 : i32
    %c0_i32_0 = arith.constant 0 : i32
    %c0_i32_1 = arith.constant 0 : i32
    return %c0_i32, %c0_i32_0 : i32, i32
  }
  func.func @transform_2(%arg0: i32) -> (i32, i32) {
    %c0_i32 = arith.constant 0 : i32
    %c0_i32_0 = arith.constant 0 : i32
    %c0_i32_1 = arith.constant 0 : i32
    return %c0_i32, %c0_i32_0 : i32, i32
  }
  func.func @transform_3(%arg0: i32) -> (i32, i32) {
    %c0_i32 = arith.constant 0 : i32
    %c0_i32_0 = arith.constant 0 : i32
    %c0_i32_1 = arith.constant 0 : i32
    return %c0_i32, %c0_i32_0 : i32, i32
  }
  func.func @transform_4(%arg0: i32) -> (i32, i32) {
    %c0_i32 = arith.constant 0 : i32
    %c0_i32_0 = arith.constant 0 : i32
    %c0_i32_1 = arith.constant 0 : i32
    return %c0_i32, %c0_i32_0 : i32, i32
  }
  func.func @transform_5(%arg0: i32) -> (i32, i32, i32) {
    %c0_i32 = arith.constant 0 : i32
    %c0_i32_0 = arith.constant 0 : i32
    %c0_i32_1 = arith.constant 0 : i32
    return %arg0, %c0_i32, %c0_i32_0 : i32, i32, i32
  }
}

</mosaic_0001>

<bundles_post_ra>
// kernel: _asrnn_pallas.1
= control target key start
LH: loop header
LB: loop body
LE: loop exit
PB: predicated region body
PF: predicated region fallthrough
CT: control target
= control target key end

     0   :  { %10 = vsyncpa [#allocation4], 0  ;;  %s400_s0 = inlined_call_operand.hbm [shape: f32[1,8,16], index: 0, kind: input, shape index: {}]   ;;  %s401_s1 = inlined_call_operand.hbm [shape: f32[8,32], index: 1, kind: input, shape index: {}]   ;;  %s402_s2 = inlined_call_operand.hbm [shape: f32[16,64], index: 2, kind: input, shape index: {}]   ;;  %s403_s3 = inlined_call_operand.hbm [shape: f32[32,64], index: 3, kind: input, shape index: {}]   ;;  %s404_s4 = inlined_call_operand.vmem [shape: f32[1,64], index: 4, kind: input, shape index: {}]   ;;  %s405_s5 = inlined_call_operand.hbm [shape: f32[1,8,32], index: 5, kind: output, shape index: {}]  }
   0x1   :  { %11 = vsyncpa [#allocation7], 0 }
   0x2   :  { %12 = vsyncpa [#allocation10], 0  ;;  %s30_s20 = sshll.u32 %s401_s1, 4  ;;  %s31_s20 = int_to_ptr.hbm [resolvable:$true] %s30_s20 }
   0x3   :  { %13 = vsyncpa [#allocation5], 0  ;;  %s340_s21 = smov [#allocation6]   ;;  %s19_s25 = sshll.u32 %s400_s0, 4  ;;  %s20_s25 = int_to_ptr.hbm [resolvable:$true] %s19_s25 }
   0x4   :  { %s32_s22 = sshll.u32 %s340_s21, 4  ;;  %s341_s26 = smov [#allocation3]   ;;  %s33_s22 = int_to_ptr.vmem [resolvable:$true] %s32_s22 }
   0x5   :  { %35 = dma.hbm_to_vmem [thread:$0]  %s31_s20, 128, %s33_s22, [#allocation7]  }
   0x6   :  { %s21_s27 = sshll.u32 %s341_s26, 4  ;;  %s40_s30 = sshll.u32 %s402_s2, 4  ;;  %s22_s27 = int_to_ptr.vmem [resolvable:$true] %s21_s27  ;;  %s41_s30 = int_to_ptr.hbm [resolvable:$true] %s40_s30 }
   0x7   :  { %24 = dma.hbm_to_vmem [thread:$0]  %s20_s25, 128, %s22_s27, [#allocation4]  }
   0x8   :  { %s342_s1 = smov [#allocation8]   ;;  %s53_s9 = sshll.u32 %s403_s3, 4  ;;  %s54_s9 = int_to_ptr.hbm [resolvable:$true] %s53_s9 }
   0x9   :  { %s42_s6 = sshll.u32 %s342_s1, 4  ;;  %s343_s10 = smov 128   ;;  %s43_s6 = int_to_ptr.vmem [resolvable:$true] %s42_s6 }
   0xa   :  { %s344_s0 = smov 8   ;;  %s345_s11 = smov [#allocation9]  }
   0xb   :  { %48 = dma.hbm_to_vmem [thread:$0]  %s41_s30, 256, %s43_s6, [#allocation7], %s343_s10, %s343_s10, %s344_s0  }
   0xc   :  { %s55_s12 = sshll.u32 %s345_s11, 4  ;;  %s56_s12 = int_to_ptr.vmem [resolvable:$true] %s55_s12 }
   0xd   :  { %61 = dma.hbm_to_vmem [thread:$0]  %s54_s9, 512, %s56_s12, [#allocation10], %s343_s10, %s343_s10, %s344_s0  }
   0xe   :  { %332 = dma.done.wait [#allocation4], 128  }
   0xf   :  { %333 = vsyncadd [#allocation4], 4294967168 }
  0x10   :  { %334 = dma.done.wait [#allocation7], 384  }
  0x11   :  { %335 = vsyncadd [#allocation7], 4294966912 }
  0x12   :  { %336 = dma.done.wait [#allocation10], 512  }
  0x13   :  { %337 = vsyncadd [#allocation10], 4294966784  ;;  %v92_v0 = vld [vmem:[#allocation9 + $0x18] sm:$0xff]  ;;  %v91_v1 = vld [vmem:[#allocation9 + $0x10] sm:$0xff]  ;;  %vm85_vm0 = vcmask 261120   ;;  %vm123_vm1 = vcmask 130048  }
  0x14   :  { %115 = vmatpush.msra.mxu0 %v92_v0  ;;  %v90_v2 = vld [vmem:[#allocation9 + $0x8] sm:$0xff]  ;;  %v88_v3 = vld [vmem:[#allocation8 + $0x8] sm:$0xff]  ;;  %v87_v4 = vld [vmem:[#allocation8] sm:$0xff]  ;;  %s346_s13 = smov 96   ;;  %s182_s17 = sshll.u32 %s405_s5, 4  ;;  %s183_s17 = int_to_ptr.hbm [resolvable:$true] %s182_s17 }
  0x15   :  { %141 = vmatpush.msra.mxu1 %v88_v3  ;;  %v84_v5 = vld [vmem:[#allocation6] sm:$0xff]  ;;  %v98_v6 = vld [vmem:[#allocation3] sm:$0xff]  ;;  %v205_v10 = vld [vmem:[%s404_s4] ss:$0 sm:$0xff]  ;;  %s347_s4 = smov [#allocation11]  }
  0x16   :  { %116 = vmatpush.msra.mxu0 %v91_v1  ;;  %86 = vst.msk [vmem:[#allocation2] sm:$0xff] %vm85_vm0, %v84_v5  ;;  %v89_v7 = vld [vmem:[#allocation9] sm:$0xff]  ;;  %s180_s14 = sshll.u32 %s347_s4, 4  ;;  %s181_s14 = int_to_ptr.vmem [resolvable:$true] %s180_s14 }
  0x17   :  { %142 = vmatpush.msra.mxu1 %v87_v4 }
  0x18   :  { %117 = vmatpush.msra.mxu0 %v90_v2  ;;  %195 = vmatmul.msk.f32.vlgmr.msra.gmra.mxu1 %vm123_vm1, %v98_v6 }
  0x1a   :  { %118 = vmatpush.msra.mxu0 %v89_v7 }
  0x1d   :  { %v97_v8 = vld [vmem:[#allocation2] sm:$0xff] }
  0x1e   :  { %194 = vmatmul.msk.f32.vlgmr.msra.gmra.mxu0 %vm85_vm0, %v97_v8 }
  0x95   :  { %v144_v9 = vpop.f32.mrf.mxu1 }
  0x9b   :  { %v120_v11 = vpop.f32.mrf.mxu0 }
  0x9c   :  { %v145_v12 = vadd.f32 %v144_v9, %v120_v11 }
  0x9e   :  { %v147_v13 = vadd.f32 %v205_v10, %v145_v12 }
  0xa0   :  { %206 = vtanh.f32 %v147_v13  ;;  %v196_v15 = vmul.f32 -1.442695, %v147_v13 }
  0xa2   :  { %208 = vpow2.f32 %v196_v15 }
  0xa6   :  { %v207_v14 = vpop.eup %206 }
  0xa7   :  { %169 = vrot.lane.b32.xlu0 %v207_v14, %s346_s13 }
  0xa8   :  { %v209_v16 = vpop.eup %208 }
  0xa9   :  { %v151_v17 = vadd.f32 1.0, %v209_v16 }
  0xab   :  { %210 = vrcp.f32 %v151_v17  ;;  %v163_v23 = vand.u32 2147483648, %v151_v17  ;;  %vm157_vm3 = vweird.f32 %v151_v17  ;;  %v161_v24 = vand.u32 2147483647, %v151_v17 }
  0xad   :  { %v164_v26 = vor.u32 1.1754944e-38, %v163_v23  ;;  %vm162_vm5 = vcmp.eq.f32.partialorder %v161_v24, 8.507059e+37 }
  0xb1   :  { %v211_v18 = vpop.eup %210 }
  0xb2   :  { %v153_v19 = vmul.f32 %v211_v18, %v151_v17  ;;  %vm158_vm2 = vweird.f32 %v211_v18 }
  0xb3   :  { %vm159_vm4 = vmor %vm157_vm3, %vm158_vm2 }
  0xb4   :  { %v154_v20 = vsub.f32 1.0, %v153_v19 }
  0xb6   :  { %v155_v21 = vmul.f32 %v211_v18, %v154_v20 }
  0xb8   :  { %v156_v22 = vadd.f32 %v211_v18, %v155_v21 }
  0xba   :  { %v160_v25 = vsel %vm159_vm4, %v211_v18, %v156_v22 }
  0xbb   :  { %v165_v27 = vsel %vm162_vm5, %v164_v26, %v160_v25 }
 0x119   :  { %v170_v28 = vpop.permute.xlu0 %169 }
 0x11a   :  { %v172_v29 = vmul.f32 %v170_v28, %v165_v27 }
 0x11c   :  { %174 = vst.msk [vmem:[#allocation2] sm:$0xff] %vm85_vm0, %v172_v29 }
 0x11d   :  { %173 = vst.msk [vmem:[#allocation11] sm:$0xff] %vm85_vm0, %v172_v29 }
 0x11e   :  { %185 = dma.vmem_to_hbm [thread:$0]  %s181_s14, 128, %s183_s17, [#allocation5]  }
 0x11f   :  { %338 = dma.done.wait [#allocation5], 128  }
 0x120   :  { %339 = vsyncadd [#allocation5], 4294967168 }
 0x121   :  { %190 = vsyncpa [#allocation4], 1 }
 0x122   :  { %191 = vsyncpa [#allocation7], 1 }
 0x123   :  { %192 = vsyncpa [#allocation10], 1 }
 0x124   :  { %193 = vsyncpa [#allocation5], 1 }

</bundles_post_ra>
